<compile_context>
chip_gen: v5e
topology: v5e:2x2
jax: 0.10.0
libtpu: 0.0.40
codegen_flags: <defaults>
</compile_context>

<pallas_src>
import jax
import jax.numpy as jnp
import numpy as np
from jax import lax
from jax.experimental import pallas as pl
from jax.experimental.pallas import tpu as pltpu

_HI = lax.Precision.HIGHEST  # used only by the pure-JAX reference


def _make_mainblock_kernel(K, T, R, L, pad_l):
    def kernel(*refs):
        x_ref, res_w_ref, bias_ref = refs[0], refs[1], refs[2]
        sub_refs = refs[3:3 + 2 * R]
        out_ref = refs[3 + 2 * R]

        x = x_ref[...]                                          # (C_in, L) f32

        # 'same'-padding boundary masks, built ONCE per grid step from one lane iota.
        # (JAX does not CSE broadcast_in_dim -> never rebuild these inside the loops.)
        t = lax.broadcasted_iota(jnp.int32, (1, L), 1) % T       # time index per lane
        masks = {}
        for k in range(K):
            if k == pad_l:
                continue                                         # zero-shift tap: no mask
            d = k - pad_l
            masks[k] = (t >= -d) & (t < T - d)                   # bool (1, L)

        cur = x
        for i in range(R):
            dw_ref = sub_refs[2 * i]                             # (K, C_prev, 1) f32 taps
            pw_ref = sub_refs[2 * i + 1]                         # (C_out, C_prev) bf16

            # Depthwise 'same' conv: per-tap lane roll (XLU) + boundary mask (VPU)
            # + multiply-accumulate (VPU).  No MXU work, no VMEM scratch round-trip.
            acc = dw_ref[pad_l] * cur                            # center tap, shift = 0
            for k in range(K):
                if k == pad_l:
                    continue
                shifted = pltpu.roll(cur, shift=(pad_l - k) % L, axis=1)
                acc = acc + dw_ref[k] * jnp.where(masks[k], shifted, 0.0)

            # Pointwise conv on the MXU (bf16 x bf16 -> f32 accumulate).  BN scale is
            # folded into pw_ref; BN shift + pointwise bias + depthwise bias pushed
            # through the pointwise weight are folded into bias_ref[i + 1].
            y = jnp.dot(pw_ref[...], acc.astype(jnp.bfloat16),
                        preferred_element_type=jnp.float32) + bias_ref[i + 1]
            if i == R - 1:
                # Residual 1x1 conv (BN folded) deferred to its single use: only x
                # (narrower than the res slab) stays live across the sub-blocks.
                res = jnp.dot(res_w_ref[...], x.astype(jnp.bfloat16),
                              preferred_element_type=jnp.float32) + bias_ref[0]
                y = y + res
            cur = jnp.maximum(y, 0.0)                            # ReLU; Dropout = identity (eval)

        out_ref[...] = cur.astype(out_ref.dtype)

    return kernel


def _round_up(a, m):
    return ((a + m - 1) // m) * m


def _choose_layout(B, T, max_lanes):
    """Pick a batch block so the lane slab bblk*T (padded up to a multiple of 128)
    stays inside a VMEM-friendly budget, wastes as little padding as possible, gets
    large enough to reach the HBM roofline, and — when free — leaves >=2 grid steps
    so v7x's two TensorCores can split the 'parallel' batch axis."""
    best = None
    for bblk in range(1, B + 1):
        if B % bblk:
            continue
        L = _round_up(bblk * T, 128)
        pad = L - bblk * T
        grid = B // bblk
        score = (L <= max_lanes,                    # fit the per-generation VMEM budget
                 -pad,                              # lane-dense: minimal zero padding
                 L >= 512,                          # amortize per-step overhead / roofline
                 grid >= 2,                         # v7x: shard batch blocks across cores
                 L if L <= max_lanes else -L)       # then prefer the larger (fitting) tile
        if best is None or score > best[0]:
            best = (score, bblk, L)
    _, bblk, L = best
    return bblk, L


def mainblock_forward(x, params, K, R, *, max_lanes=2048):
    """Fused MainBlock forward.  x: (B, C_in, T) f32 -> (B, C_out, T) f32."""
    B, C_in, T = x.shape
    C_out = params["res_w"].shape[0]
    pad_l = (K - 1) // 2

    bblk, L = _choose_layout(B, T, max_lanes)
    nblk = B // bblk
    L_real = bblk * T

    # ---- fold BN (inference) + all conv biases into weights / one bias stack ----
    res_w_f = (params["res_scale"] * params["res_w"]).astype(jnp.bfloat16)
    bias_list = [params["res_scale"] * params["res_b"] + params["res_shift"]]
    sub_weights = []
    for i in range(R):
        sp = params["sub"][i]
        pw_w_f = (sp["bn_scale"] * sp["pw_w"]).astype(jnp.bfloat16)
        b_f = sp["bn_scale"] * (sp["pw_w"] @ sp["dw_b"] + sp["pw_b"]) + sp["bn_shift"]
        dw_w_f = jnp.transpose(sp["dw_w"], (1, 0))[:, :, None].astype(jnp.float32)  # (K, Cp, 1)
        sub_weights += [dw_w_f, pw_w_f]
        bias_list.append(b_f)
    bias_stack = jnp.stack([b.astype(jnp.float32) for b in bias_list], axis=0)  # (R+1, C_out, 1)

    # ---- activations: (B, C_in, T) -> lane-dense (C_in, nblk*L) slab, L % 128 == 0 ----
    xr = (x.reshape(nblk, bblk, C_in, T)
            .transpose(0, 2, 1, 3)
            .reshape(nblk, C_in, L_real))
    if L != L_real:
        xr = jnp.pad(xr, ((0, 0), (0, 0), (0, L - L_real)))
    x_flat = xr.transpose(1, 0, 2).reshape(C_in, nblk * L)

    kernel = _make_mainblock_kernel(K, T, R, L, pad_l)

    in_specs = [
        pl.BlockSpec((C_in, L), lambda g: (0, g)),              # x slab (streams per step)
        pl.BlockSpec((C_out, C_in), lambda g: (0, 0)),          # folded residual weight (bf16)
        pl.BlockSpec((R + 1, C_out, 1), lambda g: (0, 0, 0)),   # folded biases (stacked, f32)
    ]
    for i in range(R):
        cp = C_in if i == 0 else C_out
        in_specs.append(pl.BlockSpec((K, cp, 1), lambda g: (0, 0, 0)))   # depthwise taps (f32)
        in_specs.append(pl.BlockSpec((C_out, cp), lambda g: (0, 0)))     # folded pw weight (bf16)
    out_spec = pl.BlockSpec((C_out, L), lambda g: (0, g))

    out_flat = pl.pallas_call(
        kernel,
        out_shape=jax.ShapeDtypeStruct((C_out, nblk * L), x.dtype),
        grid_spec=pltpu.PrefetchScalarGridSpec(
            num_scalar_prefetch=0,
            grid=(nblk,),
            in_specs=in_specs,
            out_specs=out_spec,
        ),
        compiler_params=pltpu.CompilerParams(dimension_semantics=("parallel",)),
    )(x_flat, res_w_f, bias_stack, *sub_weights)

    out = (out_flat.reshape(C_out, nblk, L)[:, :, :L_real]
                   .reshape(C_out, nblk, bblk, T)
                   .transpose(1, 2, 0, 3)
                   .reshape(B, C_out, T))
    return out


# ---------------- pure-JAX reference (exact f32, for correctness check) ----------------
def ref_forward(x, params, K, R):
    pad_l = (K - 1) // 2
    pad_r = K - 1 - pad_l

    def pointwise(y, w, b):
        return jnp.einsum("oc,bct->bot", w, y, precision=_HI) + b[None, :, :]

    def depthwise(y, w, b):
        T = y.shape[-1]
        yp = jnp.pad(y, ((0, 0), (0, 0), (pad_l, pad_r)))
        acc = sum(w[None, :, k:k + 1] * yp[:, :, k:k + T] for k in range(K))
        return acc + b[None, :, :]

    def bn(y, s, sh):
        return y * s[None, :, :] + sh[None, :, :]

    res = bn(pointwise(x, params["res_w"], params["res_b"]),
             params["res_scale"], params["res_shift"])
    cur = x
    for i in range(R):
        sp = params["sub"][i]
        y = depthwise(cur, sp["dw_w"], sp["dw_b"])
        y = pointwise(y, sp["pw_w"], sp["pw_b"])
        y = bn(y, sp["bn_scale"], sp["bn_shift"])
        if i == R - 1:
            y = y + res
        cur = jnp.maximum(y, 0.0)
    return cur


# ---------------- deterministic parameter construction ----------------
def _bn_fold(key, C, eps=1e-5):
    k1, k2, k3, k4 = jax.random.split(key, 4)
    gamma = 1.0 + 0.1 * jax.random.normal(k1, (C,))
    beta = 0.1 * jax.random.normal(k2, (C,))
    rmean = 0.1 * jax.random.normal(k3, (C,))
    rvar = jnp.abs(jax.random.normal(k4, (C,))) + 0.5
    scale = gamma / jnp.sqrt(rvar + eps)
    shift = beta - rmean * scale
    return (scale.reshape(C, 1).astype(jnp.float32),
            shift.reshape(C, 1).astype(jnp.float32))


def make_params(key, C_in, C_out, K, R):
    keys = jax.random.split(key, 2 + 5 * R + 3)
    ki = iter(range(len(keys)))
    params = {}
    params["res_w"] = (0.1 * jax.random.normal(keys[next(ki)], (C_out, C_in))
                       ).astype(jnp.float32)
    params["res_b"] = (0.1 * jax.random.normal(keys[next(ki)], (C_out, 1))
                       ).astype(jnp.float32)
    params["res_scale"], params["res_shift"] = _bn_fold(keys[next(ki)], C_out)

    subs = []
    c_prev = C_in
    for _ in range(R):
        sp = {}
        sp["dw_w"] = (0.1 * jax.random.normal(keys[next(ki)], (c_prev, K))
                      ).astype(jnp.float32)
        sp["dw_b"] = (0.1 * jax.random.normal(keys[next(ki)], (c_prev, 1))
                      ).astype(jnp.float32)
        sp["pw_w"] = (0.1 * jax.random.normal(keys[next(ki)], (C_out, c_prev))
                      ).astype(jnp.float32)
        sp["pw_b"] = (0.1 * jax.random.normal(keys[next(ki)], (C_out, 1))
                      ).astype(jnp.float32)
        sp["bn_scale"], sp["bn_shift"] = _bn_fold(keys[next(ki)], C_out)
        subs.append(sp)
        c_prev = C_out
    params["sub"] = subs
    return params


if __name__ == "__main__":
    B, C_in, C_out, T, K, R = 2, 16, 32, 64, 5, 2

    key = jax.random.PRNGKey(0)
    kx, kp = jax.random.split(key)
    x = jax.random.normal(kx, (B, C_in, T), dtype=jnp.float32)
    params = make_params(kp, C_in, C_out, K, R)

    out = jax.block_until_ready(mainblock_forward(x, params, K, R))
    ref = jax.block_until_ready(ref_forward(x, params, K, R))

    assert out.shape == (B, C_out, T), out.shape
    # Tolerance reflects bf16 MXU operands (~2^-9 relative rounding per operand);
    # the f32-exact reference would flag any structural bug (mask/shift/folding)
    # with errors orders of magnitude larger than this.
    np.testing.assert_allclose(np.asarray(out), np.asarray(ref),
                               rtol=1e-2, atol=1e-2)
    print("KERNEL_OK")
</pallas_src>

<mosaic_0001>
module attributes {stable_mosaic.version = 11 : i64} {
  func.func @kernel(%arg0: i32, %arg1: memref<16x128xf32, #tpu.memory_space<vmem>>, %arg2: memref<32x16xbf16, #tpu.memory_space<vmem>>, %arg3: memref<3x32x1xf32, #tpu.memory_space<vmem>>, %arg4: memref<5x16x1xf32, #tpu.memory_space<vmem>>, %arg5: memref<32x16xbf16, #tpu.memory_space<vmem>>, %arg6: memref<5x32x1xf32, #tpu.memory_space<vmem>>, %arg7: memref<32x32xbf16, #tpu.memory_space<vmem>>, %arg8: memref<32x128xf32, #tpu.memory_space<vmem>>) attributes {dimension_semantics = [#tpu.dimension_semantics<parallel>], iteration_bounds = array<i64: 1>, scalar_prefetch = 0 : i64, scratch_operands = 0 : i64, tpu.core_type = #tpu.core_type<tc>, window_params = [{transform_indices = @transform_0, window_bounds = array<i64: 16, 128>}, {pipeline_mode = #tpu.pipeline_mode<synchronous>, transform_indices = @transform_1, window_bounds = array<i64: 32, 16>}, {pipeline_mode = #tpu.pipeline_mode<synchronous>, transform_indices = @transform_2, window_bounds = array<i64: 3, 32, 1>}, {pipeline_mode = #tpu.pipeline_mode<synchronous>, transform_indices = @transform_3, window_bounds = array<i64: 5, 16, 1>}, {pipeline_mode = #tpu.pipeline_mode<synchronous>, transform_indices = @transform_4, window_bounds = array<i64: 32, 16>}, {pipeline_mode = #tpu.pipeline_mode<synchronous>, transform_indices = @transform_5, window_bounds = array<i64: 5, 32, 1>}, {pipeline_mode = #tpu.pipeline_mode<synchronous>, transform_indices = @transform_6, window_bounds = array<i64: 32, 32>}, {transform_indices = @transform_7, window_bounds = array<i64: 32, 128>}]} {
    %c0 = arith.constant 0 : index
    %c0_0 = arith.constant 0 : index
    %0 = vector.load %arg1[%c0, %c0_0] : memref<16x128xf32, #tpu.memory_space<vmem>>, vector<16x128xf32>
    %1 = tpu.iota {dimensions = array<i32: 1>} : vector<1x128xi32>
    %c64_i32 = arith.constant 64 : i32
    %c0_i32 = arith.constant 0 : i32
    %2 = arith.cmpi eq, %c64_i32, %c0_i32 : i32
    %c1_i32 = arith.constant 1 : i32
    %3 = arith.select %2, %c1_i32, %c64_i32 : i32
    %4 = vector.broadcast %3 : i32 to vector<1x128xi32>
    %5 = arith.remsi %1, %4 : vector<1x128xi32>
    %c0_i32_1 = arith.constant 0 : i32
    %6 = vector.broadcast %c0_i32_1 : i32 to vector<1x128xi32>
    %7 = arith.cmpi ne, %5, %6 : vector<1x128xi32>
    %c0_i32_2 = arith.constant 0 : i32
    %8 = vector.broadcast %c0_i32_2 : i32 to vector<1x128xi32>
    %9 = arith.cmpi slt, %5, %8 : vector<1x128xi32>
    %c0_i32_3 = arith.constant 0 : i32
    %10 = arith.cmpi slt, %3, %c0_i32_3 : i32
    %11 = vector.broadcast %10 : i1 to vector<1x128xi1>
    %12 = vector.broadcast %11 : vector<1x128xi1> to vector<1x128xi1>
    %13 = arith.xori %9, %12 : vector<1x128xi1>
    %14 = arith.andi %13, %7 : vector<1x128xi1>
    %15 = vector.broadcast %3 : i32 to vector<1x128xi32>
    %16 = arith.addi %5, %15 : vector<1x128xi32>
    %17 = arith.select %14, %16, %5 : vector<1x128xi1>, vector<1x128xi32>
    %c2_i32 = arith.constant 2 : i32
    %18 = vector.broadcast %c2_i32 : i32 to vector<1x128xi32>
    %19 = arith.cmpi sge, %17, %18 : vector<1x128xi32>
    %c66_i32 = arith.constant 66 : i32
    %20 = vector.broadcast %c66_i32 : i32 to vector<1x128xi32>
    %21 = arith.cmpi slt, %17, %20 : vector<1x128xi32>
    %22 = arith.andi %19, %21 : vector<1x128xi1>
    %c1_i32_4 = arith.constant 1 : i32
    %23 = vector.broadcast %c1_i32_4 : i32 to vector<1x128xi32>
    %24 = arith.cmpi sge, %17, %23 : vector<1x128xi32>
    %c65_i32 = arith.constant 65 : i32
    %25 = vector.broadcast %c65_i32 : i32 to vector<1x128xi32>
    %26 = arith.cmpi slt, %17, %25 : vector<1x128xi32>
    %27 = arith.andi %24, %26 : vector<1x128xi1>
    %c-1_i32 = arith.constant -1 : i32
    %28 = vector.broadcast %c-1_i32 : i32 to vector<1x128xi32>
    %29 = arith.cmpi sge, %17, %28 : vector<1x128xi32>
    %c63_i32 = arith.constant 63 : i32
    %30 = vector.broadcast %c63_i32 : i32 to vector<1x128xi32>
    %31 = arith.cmpi slt, %17, %30 : vector<1x128xi32>
    %32 = arith.andi %29, %31 : vector<1x128xi1>
    %c-2_i32 = arith.constant -2 : i32
    %33 = vector.broadcast %c-2_i32 : i32 to vector<1x128xi32>
    %34 = arith.cmpi sge, %17, %33 : vector<1x128xi32>
    %c62_i32 = arith.constant 62 : i32
    %35 = vector.broadcast %c62_i32 : i32 to vector<1x128xi32>
    %36 = arith.cmpi slt, %17, %35 : vector<1x128xi32>
    %37 = arith.andi %34, %36 : vector<1x128xi1>
    %c2 = arith.constant 2 : index
    %c0_5 = arith.constant 0 : index
    %c0_6 = arith.constant 0 : index
    %38 = vector.load %arg4[%c2, %c0_5, %c0_6] : memref<5x16x1xf32, #tpu.memory_space<vmem>>, vector<1x16x1xf32>
    %39 = vector.shape_cast %38 : vector<1x16x1xf32> to vector<16x1xf32>
    %40 = vector.broadcast %39 : vector<16x1xf32> to vector<16x128xf32>
    %41 = arith.mulf %40, %0 : vector<16x128xf32>
    %c2_i32_7 = arith.constant 2 : i32
    %42 = tpu.dynamic_rotate %0 by %c2_i32_7 dim 1 : vector<16x128xf32>, i32 -> vector<16x128xf32>
    %c0_8 = arith.constant 0 : index
    %c0_9 = arith.constant 0 : index
    %c0_10 = arith.constant 0 : index
    %43 = vector.load %arg4[%c0_8, %c0_9, %c0_10] : memref<5x16x1xf32, #tpu.memory_space<vmem>>, vector<1x16x1xf32>
    %44 = vector.shape_cast %43 : vector<1x16x1xf32> to vector<16x1xf32>
    %cst = arith.constant 0.000000e+00 : f32
    %45 = vector.shape_cast %22 : vector<1x128xi1> to vector<1x128xi1>
    %46 = vector.broadcast %45 : vector<1x128xi1> to vector<16x128xi1>
    %47 = vector.broadcast %cst : f32 to vector<16x128xf32>
    %48 = arith.select %46, %42, %47 : vector<16x128xi1>, vector<16x128xf32>
    %49 = vector.broadcast %44 : vector<16x1xf32> to vector<16x128xf32>
    %50 = arith.mulf %49, %48 : vector<16x128xf32>
    %51 = arith.addf %41, %50 : vector<16x128xf32>
    %c1_i32_11 = arith.constant 1 : i32
    %52 = tpu.dynamic_rotate %0 by %c1_i32_11 dim 1 : vector<16x128xf32>, i32 -> vector<16x128xf32>
    %c1 = arith.constant 1 : index
    %c0_12 = arith.constant 0 : index
    %c0_13 = arith.constant 0 : index
    %53 = vector.load %arg4[%c1, %c0_12, %c0_13] : memref<5x16x1xf32, #tpu.memory_space<vmem>>, vector<1x16x1xf32>
    %54 = vector.shape_cast %53 : vector<1x16x1xf32> to vector<16x1xf32>
    %cst_14 = arith.constant 0.000000e+00 : f32
    %55 = vector.shape_cast %27 : vector<1x128xi1> to vector<1x128xi1>
    %56 = vector.broadcast %55 : vector<1x128xi1> to vector<16x128xi1>
    %57 = vector.broadcast %cst_14 : f32 to vector<16x128xf32>
    %58 = arith.select %56, %52, %57 : vector<16x128xi1>, vector<16x128xf32>
    %59 = vector.broadcast %54 : vector<16x1xf32> to vector<16x128xf32>
    %60 = arith.mulf %59, %58 : vector<16x128xf32>
    %61 = arith.addf %51, %60 : vector<16x128xf32>
    %c127_i32 = arith.constant 127 : i32
    %62 = tpu.dynamic_rotate %0 by %c127_i32 dim 1 : vector<16x128xf32>, i32 -> vector<16x128xf32>
    %c3 = arith.constant 3 : index
    %c0_15 = arith.constant 0 : index
    %c0_16 = arith.constant 0 : index
    %63 = vector.load %arg4[%c3, %c0_15, %c0_16] : memref<5x16x1xf32, #tpu.memory_space<vmem>>, vector<1x16x1xf32>
    %64 = vector.shape_cast %63 : vector<1x16x1xf32> to vector<16x1xf32>
    %cst_17 = arith.constant 0.000000e+00 : f32
    %65 = vector.shape_cast %32 : vector<1x128xi1> to vector<1x128xi1>
    %66 = vector.broadcast %65 : vector<1x128xi1> to vector<16x128xi1>
    %67 = vector.broadcast %cst_17 : f32 to vector<16x128xf32>
    %68 = arith.select %66, %62, %67 : vector<16x128xi1>, vector<16x128xf32>
    %69 = vector.broadcast %64 : vector<16x1xf32> to vector<16x128xf32>
    %70 = arith.mulf %69, %68 : vector<16x128xf32>
    %71 = arith.addf %61, %70 : vector<16x128xf32>
    %c126_i32 = arith.constant 126 : i32
    %72 = tpu.dynamic_rotate %0 by %c126_i32 dim 1 : vector<16x128xf32>, i32 -> vector<16x128xf32>
    %c4 = arith.constant 4 : index
    %c0_18 = arith.constant 0 : index
    %c0_19 = arith.constant 0 : index
    %73 = vector.load %arg4[%c4, %c0_18, %c0_19] : memref<5x16x1xf32, #tpu.memory_space<vmem>>, vector<1x16x1xf32>
    %74 = vector.shape_cast %73 : vector<1x16x1xf32> to vector<16x1xf32>
    %cst_20 = arith.constant 0.000000e+00 : f32
    %75 = vector.shape_cast %37 : vector<1x128xi1> to vector<1x128xi1>
    %76 = vector.broadcast %75 : vector<1x128xi1> to vector<16x128xi1>
    %77 = vector.broadcast %cst_20 : f32 to vector<16x128xf32>
    %78 = arith.select %76, %72, %77 : vector<16x128xi1>, vector<16x128xf32>
    %79 = vector.broadcast %74 : vector<16x1xf32> to vector<16x128xf32>
    %80 = arith.mulf %79, %78 : vector<16x128xf32>
    %81 = arith.addf %71, %80 : vector<16x128xf32>
    %c0_21 = arith.constant 0 : index
    %c0_22 = arith.constant 0 : index
    %82 = vector.load %arg5[%c0_21, %c0_22] : memref<32x16xbf16, #tpu.memory_space<vmem>>, vector<32x16xbf16>
    %83 = arith.truncf %81 : vector<16x128xf32> to vector<16x128xbf16>
    %cst_23 = arith.constant dense<0.000000e+00> : vector<32x128xf32>
    %84 = tpu.matmul %82, %83, %cst_23 {dimension_numbers = #tpu.dot_dimension_numbers<[1], [0], [0], [1], [0, 0, 1, 1], [], []>} : vector<32x16xbf16>, vector<16x128xbf16>, vector<32x128xf32> -> vector<32x128xf32>
    %c1_24 = arith.constant 1 : index
    %c0_25 = arith.constant 0 : index
    %c0_26 = arith.constant 0 : index
    %85 = vector.load %arg3[%c1_24, %c0_25, %c0_26] : memref<3x32x1xf32, #tpu.memory_space<vmem>>, vector<1x32x1xf32>
    %86 = vector.shape_cast %85 : vector<1x32x1xf32> to vector<32x1xf32>
    %87 = vector.broadcast %86 : vector<32x1xf32> to vector<32x128xf32>
    %88 = arith.addf %84, %87 : vector<32x128xf32>
    %cst_27 = arith.constant 0.000000e+00 : f32
    %89 = vector.broadcast %cst_27 : f32 to vector<32x128xf32>
    %90 = arith.maximumf %88, %89 : vector<32x128xf32>
    %c2_28 = arith.constant 2 : index
    %c0_29 = arith.constant 0 : index
    %c0_30 = arith.constant 0 : index
    %91 = vector.load %arg6[%c2_28, %c0_29, %c0_30] : memref<5x32x1xf32, #tpu.memory_space<vmem>>, vector<1x32x1xf32>
    %92 = vector.shape_cast %91 : vector<1x32x1xf32> to vector<32x1xf32>
    %93 = vector.broadcast %92 : vector<32x1xf32> to vector<32x128xf32>
    %94 = arith.mulf %93, %90 : vector<32x128xf32>
    %c2_i32_31 = arith.constant 2 : i32
    %95 = tpu.dynamic_rotate %90 by %c2_i32_31 dim 1 : vector<32x128xf32>, i32 -> vector<32x128xf32>
    %c0_32 = arith.constant 0 : index
    %c0_33 = arith.constant 0 : index
    %c0_34 = arith.constant 0 : index
    %96 = vector.load %arg6[%c0_32, %c0_33, %c0_34] : memref<5x32x1xf32, #tpu.memory_space<vmem>>, vector<1x32x1xf32>
    %97 = vector.shape_cast %96 : vector<1x32x1xf32> to vector<32x1xf32>
    %cst_35 = arith.constant 0.000000e+00 : f32
    %98 = vector.shape_cast %22 : vector<1x128xi1> to vector<1x128xi1>
    %99 = vector.broadcast %98 : vector<1x128xi1> to vector<32x128xi1>
    %100 = vector.broadcast %cst_35 : f32 to vector<32x128xf32>
    %101 = arith.select %99, %95, %100 : vector<32x128xi1>, vector<32x128xf32>
    %102 = vector.broadcast %97 : vector<32x1xf32> to vector<32x128xf32>
    %103 = arith.mulf %102, %101 : vector<32x128xf32>
    %104 = arith.addf %94, %103 : vector<32x128xf32>
    %c1_i32_36 = arith.constant 1 : i32
    %105 = tpu.dynamic_rotate %90 by %c1_i32_36 dim 1 : vector<32x128xf32>, i32 -> vector<32x128xf32>
    %c1_37 = arith.constant 1 : index
    %c0_38 = arith.constant 0 : index
    %c0_39 = arith.constant 0 : index
    %106 = vector.load %arg6[%c1_37, %c0_38, %c0_39] : memref<5x32x1xf32, #tpu.memory_space<vmem>>, vector<1x32x1xf32>
    %107 = vector.shape_cast %106 : vector<1x32x1xf32> to vector<32x1xf32>
    %cst_40 = arith.constant 0.000000e+00 : f32
    %108 = vector.shape_cast %27 : vector<1x128xi1> to vector<1x128xi1>
    %109 = vector.broadcast %108 : vector<1x128xi1> to vector<32x128xi1>
    %110 = vector.broadcast %cst_40 : f32 to vector<32x128xf32>
    %111 = arith.select %109, %105, %110 : vector<32x128xi1>, vector<32x128xf32>
    %112 = vector.broadcast %107 : vector<32x1xf32> to vector<32x128xf32>
    %113 = arith.mulf %112, %111 : vector<32x128xf32>
    %114 = arith.addf %104, %113 : vector<32x128xf32>
    %c127_i32_41 = arith.constant 127 : i32
    %115 = tpu.dynamic_rotate %90 by %c127_i32_41 dim 1 : vector<32x128xf32>, i32 -> vector<32x128xf32>
    %c3_42 = arith.constant 3 : index
    %c0_43 = arith.constant 0 : index
    %c0_44 = arith.constant 0 : index
    %116 = vector.load %arg6[%c3_42, %c0_43, %c0_44] : memref<5x32x1xf32, #tpu.memory_space<vmem>>, vector<1x32x1xf32>
    %117 = vector.shape_cast %116 : vector<1x32x1xf32> to vector<32x1xf32>
    %cst_45 = arith.constant 0.000000e+00 : f32
    %118 = vector.shape_cast %32 : vector<1x128xi1> to vector<1x128xi1>
    %119 = vector.broadcast %118 : vector<1x128xi1> to vector<32x128xi1>
    %120 = vector.broadcast %cst_45 : f32 to vector<32x128xf32>
    %121 = arith.select %119, %115, %120 : vector<32x128xi1>, vector<32x128xf32>
    %122 = vector.broadcast %117 : vector<32x1xf32> to vector<32x128xf32>
    %123 = arith.mulf %122, %121 : vector<32x128xf32>
    %124 = arith.addf %114, %123 : vector<32x128xf32>
    %c126_i32_46 = arith.constant 126 : i32
    %125 = tpu.dynamic_rotate %90 by %c126_i32_46 dim 1 : vector<32x128xf32>, i32 -> vector<32x128xf32>
    %c4_47 = arith.constant 4 : index
    %c0_48 = arith.constant 0 : index
    %c0_49 = arith.constant 0 : index
    %126 = vector.load %arg6[%c4_47, %c0_48, %c0_49] : memref<5x32x1xf32, #tpu.memory_space<vmem>>, vector<1x32x1xf32>
    %127 = vector.shape_cast %126 : vector<1x32x1xf32> to vector<32x1xf32>
    %cst_50 = arith.constant 0.000000e+00 : f32
    %128 = vector.shape_cast %37 : vector<1x128xi1> to vector<1x128xi1>
    %129 = vector.broadcast %128 : vector<1x128xi1> to vector<32x128xi1>
    %130 = vector.broadcast %cst_50 : f32 to vector<32x128xf32>
    %131 = arith.select %129, %125, %130 : vector<32x128xi1>, vector<32x128xf32>
    %132 = vector.broadcast %127 : vector<32x1xf32> to vector<32x128xf32>
    %133 = arith.mulf %132, %131 : vector<32x128xf32>
    %134 = arith.addf %124, %133 : vector<32x128xf32>
    %c0_51 = arith.constant 0 : index
    %c0_52 = arith.constant 0 : index
    %135 = vector.load %arg7[%c0_51, %c0_52] : memref<32x32xbf16, #tpu.memory_space<vmem>>, vector<32x32xbf16>
    %136 = arith.truncf %134 : vector<32x128xf32> to vector<32x128xbf16>
    %cst_53 = arith.constant dense<0.000000e+00> : vector<32x128xf32>
    %137 = tpu.matmul %135, %136, %cst_53 {dimension_numbers = #tpu.dot_dimension_numbers<[1], [0], [0], [1], [0, 0, 1, 1], [], []>} : vector<32x32xbf16>, vector<32x128xbf16>, vector<32x128xf32> -> vector<32x128xf32>
    %c2_54 = arith.constant 2 : index
    %c0_55 = arith.constant 0 : index
    %c0_56 = arith.constant 0 : index
    %138 = vector.load %arg3[%c2_54, %c0_55, %c0_56] : memref<3x32x1xf32, #tpu.memory_space<vmem>>, vector<1x32x1xf32>
    %139 = vector.shape_cast %138 : vector<1x32x1xf32> to vector<32x1xf32>
    %140 = vector.broadcast %139 : vector<32x1xf32> to vector<32x128xf32>
    %141 = arith.addf %137, %140 : vector<32x128xf32>
    %c0_57 = arith.constant 0 : index
    %c0_58 = arith.constant 0 : index
    %142 = vector.load %arg2[%c0_57, %c0_58] : memref<32x16xbf16, #tpu.memory_space<vmem>>, vector<32x16xbf16>
    %143 = arith.truncf %0 : vector<16x128xf32> to vector<16x128xbf16>
    %cst_59 = arith.constant dense<0.000000e+00> : vector<32x128xf32>
    %144 = tpu.matmul %142, %143, %cst_59 {dimension_numbers = #tpu.dot_dimension_numbers<[1], [0], [0], [1], [0, 0, 1, 1], [], []>} : vector<32x16xbf16>, vector<16x128xbf16>, vector<32x128xf32> -> vector<32x128xf32>
    %c0_60 = arith.constant 0 : index
    %c0_61 = arith.constant 0 : index
    %c0_62 = arith.constant 0 : index
    %145 = vector.load %arg3[%c0_60, %c0_61, %c0_62] : memref<3x32x1xf32, #tpu.memory_space<vmem>>, vector<1x32x1xf32>
    %146 = vector.shape_cast %145 : vector<1x32x1xf32> to vector<32x1xf32>
    %147 = vector.broadcast %146 : vector<32x1xf32> to vector<32x128xf32>
    %148 = arith.addf %144, %147 : vector<32x128xf32>
    %149 = arith.addf %141, %148 : vector<32x128xf32>
    %cst_63 = arith.constant 0.000000e+00 : f32
    %150 = vector.broadcast %cst_63 : f32 to vector<32x128xf32>
    %151 = arith.maximumf %149, %150 : vector<32x128xf32>
    %c0_64 = arith.constant 0 : index
    %c0_65 = arith.constant 0 : index
    %152 = vector.load %arg8[%c0_64, %c0_65] : memref<32x128xf32, #tpu.memory_space<vmem>>, vector<32x128xf32>
    tpu.vector_store %arg8[%c0_64, %c0_65], %151 {strides = array<i32>} : memref<32x128xf32, #tpu.memory_space<vmem>>, vector<32x128xf32>,
    return
  }
  func.func @transform_0(%arg0: i32) -> (i32, i32) {
    %c0_i32 = arith.constant 0 : i32
    %c0_i32_0 = arith.constant 0 : i32
    return %c0_i32, %arg0 : i32, i32
  }
  func.func @transform_1(%arg0: i32) -> (i32, i32) {
    %c0_i32 = arith.constant 0 : i32
    %c0_i32_0 = arith.constant 0 : i32
    %c0_i32_1 = arith.constant 0 : i32
    return %c0_i32, %c0_i32_0 : i32, i32
  }
  func.func @transform_2(%arg0: i32) -> (i32, i32, i32) {
    %c0_i32 = arith.constant 0 : i32
    %c0_i32_0 = arith.constant 0 : i32
    %c0_i32_1 = arith.constant 0 : i32
    %c0_i32_2 = arith.constant 0 : i32
    return %c0_i32, %c0_i32_0, %c0_i32_1 : i32, i32, i32
  }
  func.func @transform_3(%arg0: i32) -> (i32, i32, i32) {
    %c0_i32 = arith.constant 0 : i32
    %c0_i32_0 = arith.constant 0 : i32
    %c0_i32_1 = arith.constant 0 : i32
    %c0_i32_2 = arith.constant 0 : i32
    return %c0_i32, %c0_i32_0, %c0_i32_1 : i32, i32, i32
  }
  func.func @transform_4(%arg0: i32) -> (i32, i32) {
    %c0_i32 = arith.constant 0 : i32
    %c0_i32_0 = arith.constant 0 : i32
    %c0_i32_1 = arith.constant 0 : i32
    return %c0_i32, %c0_i32_0 : i32, i32
  }
  func.func @transform_5(%arg0: i32) -> (i32, i32, i32) {
    %c0_i32 = arith.constant 0 : i32
    %c0_i32_0 = arith.constant 0 : i32
    %c0_i32_1 = arith.constant 0 : i32
    %c0_i32_2 = arith.constant 0 : i32
    return %c0_i32, %c0_i32_0, %c0_i32_1 : i32, i32, i32
  }
  func.func @transform_6(%arg0: i32) -> (i32, i32) {
    %c0_i32 = arith.constant 0 : i32
    %c0_i32_0 = arith.constant 0 : i32
    %c0_i32_1 = arith.constant 0 : i32
    return %c0_i32, %c0_i32_0 : i32, i32
  }
  func.func @transform_7(%arg0: i32) -> (i32, i32) {
    %c0_i32 = arith.constant 0 : i32
    %c0_i32_0 = arith.constant 0 : i32
    return %c0_i32, %arg0 : i32, i32
  }
}

</mosaic_0001>

<bundles_post_ra>
// kernel: tpu_custom_call.1
= control target key start
LH: loop header
LB: loop body
LE: loop exit
PB: predicated region body
PF: predicated region fallthrough
CT: control target
= control target key end

     0   :  { %v716_v3 = vmov 0   ;;  %s717_s30 = smov 2   ;;  %s1037_s0 = inlined_call_operand.vmem [shape: f32[16,128], index: 0, kind: input, shape index: {}]   ;;  %s1038_s1 = inlined_call_operand.vmem [shape: bf16[32,16], index: 1, kind: input, shape index: {}]   ;;  %s1039_s2 = inlined_call_operand.vmem [shape: f32[3,32,1], index: 2, kind: input, shape index: {}]   ;;  %s1040_s3 = inlined_call_operand.vmem [shape: f32[5,16,1], index: 3, kind: input, shape index: {}]   ;;  %s1041_s4 = inlined_call_operand.vmem [shape: bf16[32,16], index: 4, kind: input, shape index: {}]   ;;  %s1042_s5 = inlined_call_operand.vmem [shape: f32[5,32,1], index: 5, kind: input, shape index: {}]   ;;  %s1043_s6 = inlined_call_operand.vmem [shape: bf16[32,32], index: 6, kind: input, shape index: {}]   ;;  %s1044_s7 = inlined_call_operand.hbm [shape: f32[32,128], index: 7, kind: output, shape index: {}]  }
   0x1   :  { %v767_v0 = vld [vmem:[%s1037_s0] sm:$0xff]  ;;  %688 = vset.pattern.permute.xlu2 %v716_v3  ;;  %687 = vset.pattern.permute.xlu1 %v716_v3 }
   0x2   :  { %v75_v1 = vld [vmem:[%s1040_s3] sm:$0xff]  ;;  %71 = vrot.lane.b32.xlu0 %v767_v0, %s717_s30 }
   0x3   :  { %v609_v2 = vld [vmem:[%s1040_s3 + $0x20] sm:$0xff]  ;;  %83 = vperm.xlu2 %688, %v75_v1   ;;  %689 = vset.pattern.permute.xlu0 %v716_v3 }
   0x4   :  { %61 = vperm.xlu1 %687, %v609_v2  }
   0x5   :  { %12 = vsyncpa [#allocation3], 0  ;;  %v780_v4 = vld [vmem:[%s1037_s0 + $0x8] sm:$0xff]  ;;  %v611_v7 = vld [vmem:[%s1040_s3 + $0x10] sm:$0xff]  ;;  %s718_s16 = smov 1   ;;  %s719_s18 = smov 127   ;;  %v30_v42 = vlaneseq }
   0x6   :  { %v76_v5 = vld [vmem:[%s1040_s3 + $0x8] sm:$0xff]  ;;  %v612_v8 = vld [vmem:[%s1040_s3 + $0x18] sm:$0xff]  ;;  %v613_v10 = vld [vmem:[%s1040_s3 + $0x30] sm:$0xff]  ;;  %s720_s23 = smov 126   ;;  %vm210_vm4 = vcmask 130048   ;;  %vm489_vm5 = vcmask 261120  }
   0x7   :  { %v610_v6 = vld [vmem:[%s1040_s3 + $0x28] sm:$0xff]  ;;  %v614_v9 = vld [vmem:[%s1040_s3 + $0x38] sm:$0xff]  ;;  %v615_v12 = vld [vmem:[%s1040_s3 + $0x40] sm:$0xff]  ;;  %v31_v45 = vand.u32 127, %v30_v42  ;;  %s597_s13 = sshll.u32 %s1044_s7, 4  ;;  %s722_s14 = smov 128   ;;  %s598_s13 = int_to_ptr.hbm [resolvable:$true] %s597_s13 }
   0x8   :  { %v616_v11 = vld [vmem:[%s1040_s3 + $0x48] sm:$0xff]  ;;  %v617_v13 = vld [vmem:[%s1039_s2 + $0x20] sm:$0xff]  ;;  %v620_v14 = vld [vmem:[%s1039_s2 + $0x38] sm:$0xff] }
   0x9   :  { %v619_v15 = vld [vmem:[%s1039_s2 + $0x30] sm:$0xff]  ;;  %v632_v16 = vld [vmem:[%s1042_s5 + $0x48] sm:$0xff]  ;;  %v631_v17 = vld [vmem:[%s1042_s5 + $0x40] sm:$0xff]  ;;  %v886_v47 = vand.u32 63, %v31_v45 }
   0xa   :  { %73 = vrot.lane.b32.xlu0 %v780_v4, %s717_s30  ;;  %v618_v18 = vld [vmem:[%s1039_s2 + $0x28] sm:$0xff]  ;;  %v633_v19 = vld [vmem:[%s1042_s5 + $0x50] sm:$0xff]  ;;  %v634_v21 = vld [vmem:[%s1042_s5 + $0x58] sm:$0xff] }
   0xb   :  { %88 = vperm.xlu2 %688, %v76_v5   ;;  %v279_v20 = vld [vmem:[%s1042_s5 + $0x10] sm:$0xff]  ;;  %v280_v22 = vld [vmem:[%s1042_s5 + $0x18] sm:$0xff]  ;;  %v635_v26 = vld [vmem:[%s1042_s5 + $0x20] sm:$0xff]  ;;  %vm44_vm0 = vcmp.ge.s32.totalorder %v886_v47, 2  ;;  %vm47_vm1 = vcmp.ge.s32.totalorder %v886_v47, 1  ;;  %vm51_vm2 = vcmp.lt.s32.totalorder %v886_v47, 63 }
   0xc   :  { %66 = vperm.xlu1 %687, %v610_v6   ;;  %v641_v23 = vld [vmem:[%s1042_s5 + $0x70] sm:$0xff]  ;;  %v638_v24 = vld [vmem:[%s1042_s5 + $0x38] sm:$0xff]  ;;  %v278_v27 = vld [vmem:[%s1042_s5 + $0x8] sm:$0xff]  ;;  %vm54_vm3 = vcmp.lt.s32.totalorder %v886_v47, 62 }
   0xd   :  { %v637_v25 = vld [vmem:[%s1042_s5 + $0x30] sm:$0xff]  ;;  %v277_v28 = vld [vmem:[%s1042_s5] sm:$0xff]  ;;  %v646_v29 = vld [vmem:[%s1042_s5 + $0x98] sm:$0xff] }
   0xe   :  { %v645_v30 = vld [vmem:[%s1042_s5 + $0x90] sm:$0xff]  ;;  %v642_v31 = vld [vmem:[%s1042_s5 + $0x78] sm:$0xff]  ;;  %v639_v32 = vld [vmem:[%s1042_s5 + $0x60] sm:$0xff] }
   0xf   :  { %v636_v33 = vld [vmem:[%s1042_s5 + $0x28] sm:$0xff]  ;;  %v643_v42 = vld [vmem:[%s1042_s5 + $0x80] sm:$0xff] }
  0x10   :  { %v640_v35 = vld [vmem:[%s1042_s5 + $0x68] sm:$0xff]  ;;  %v520_v45 = vld [vmem:[%s1039_s2] sm:$0xff] }
  0x12   :  { %95 = vrot.lane.b32.xlu0 %v767_v0, %s718_s16 }
  0x13   :  { %108 = vperm.xlu2 %688, %v611_v7  }
  0x14   :  { %97 = vrot.lane.b32.xlu1 %v780_v4, %s718_s16 }
  0x1a   :  { %113 = vperm.xlu0 %689, %v612_v8  }
  0x1b   :  { %122 = vrot.lane.b32.xlu2 %v780_v4, %s719_s18 }
  0x1c   :  { %120 = vrot.lane.b32.xlu1 %v767_v0, %s719_s18 }
  0x22   :  { %145 = vrot.lane.b32.xlu0 %v767_v0, %s720_s23 }
  0x23   :  { %138 = vperm.xlu2 %688, %v614_v9  }
  0x24   :  { %133 = vperm.xlu1 %687, %v613_v10  }
  0x2a   :  { %163 = vperm.xlu0 %689, %v616_v11  }
  0x2b   :  { %158 = vperm.xlu2 %688, %v615_v12  }
  0x2c   :  { %147 = vrot.lane.b32.xlu1 %v780_v4, %s720_s23 }
  0x32   :  { %182 = vperm.xlu0 %689, %v617_v13  }
  0x33   :  { %197 = vperm.xlu2 %688, %v620_v14  }
  0x34   :  { %192 = vperm.xlu1 %687, %v619_v15  }
  0x3a   :  { %252 = vperm.xlu0 %689, %v632_v16  }
  0x3b   :  { %247 = vperm.xlu2 %688, %v631_v17  }
  0x3c   :  { %187 = vperm.xlu1 %687, %v618_v18  }
  0x42   :  { %257 = vperm.xlu0 %689, %v633_v19  }
  0x43   :  { %297 = vperm.xlu2 %688, %v279_v20  }
  0x44   :  { %262 = vperm.xlu1 %687, %v634_v21   ;;  %v671_v21 = vld [vmem:[%s1041_s4] sm:$0xff] }
  0x4a   :  { %302 = vperm.xlu0 %689, %v280_v22   ;;  %v672_v22 = vld [vmem:[%s1041_s4 + $0x8] sm:$0xff] }
  0x4b   :  { %387 = vperm.xlu2 %688, %v641_v23   ;;  %v519_v23 = vpack.c.bf16 %v780_v4, %v767_v0 }
  0x4c   :  { %347 = vperm.xlu1 %687, %v638_v24   ;;  %v675_v24 = vld [vmem:[%s1038_s1] sm:$0xff] }
  0x4d   :  { %567 = vmatpush.bf16.msra.mxu2 %v519_v23 }
  0x50   :  { %669 = vmatmul.msk.bf16.vlgmr.msra.gmra.mxu2 %vm210_vm4, %v675_v24 }
  0x52   :  { %342 = vperm.xlu0 %689, %v637_v25   ;;  %v676_v25 = vld [vmem:[%s1038_s1 + $0x8] sm:$0xff]  ;;  %s723_s1 = smov 8  }
  0x53   :  { %332 = vperm.xlu2 %688, %v635_v26  }
  0x54   :  { %292 = vperm.xlu1 %687, %v278_v27  }
  0x5a   :  { %287 = vperm.xlu0 %689, %v277_v28  }
  0x5b   :  { %437 = vperm.xlu2 %688, %v646_v29  }
  0x5c   :  { %432 = vperm.xlu1 %687, %v645_v30  }
  0x5d   :  { %v84_v34 = vpop.permute.xlu2 %83 }
  0x60   :  { %670 = vmatmul.msk.bf16.gmra.mxu2 %vm210_vm4, %v676_v25 }
  0x62   :  { %392 = vperm.xlu0 %689, %v642_v31  }
  0x63   :  { %377 = vperm.xlu2 %688, %v639_v32  }
  0x65   :  { %v89_v38 = vpop.permute.xlu2 %88 }
  0x6a   :  { %337 = vperm.xlu0 %689, %v636_v33  }
  0x6d   :  { %v109_v41 = vpop.permute.xlu2 %108 }
  0x72   :  { %382 = vperm.xlu0 %689, %v640_v35  }
  0x74   :  { %v72_v36 = vpop.permute.xlu0 %71 }
  0x75   :  { %v123_v46 = vpop.permute.xlu2 %122  ;;  %v79_v50 = vsel %vm44_vm0, %v72_v36, 0.0 }
  0x76   :  { %v62_v37 = vpop.permute.xlu1 %61  ;;  %v91_v55 = vmul.f32 %v84_v34, %v79_v50  ;;  %v130_v5 = vsel %vm51_vm2, %v123_v46, 0.0  ;;  %v644_v50 = vld [vmem:[%s1042_s5 + $0x88] sm:$0xff] }
  0x77   :  { %v69_v56 = vmul.f32 %v62_v37, %v767_v0 }
  0x79   :  { %v93_v1 = vadd.f32 %v91_v55, %v69_v56  ;;  %v650_v55 = vld [vmem:[%s1039_s2 + $0x58] sm:$0xff] }
  0x7c   :  { %v74_v39 = vpop.permute.xlu0 %73 }
  0x7d   :  { %v80_v51 = vsel %vm44_vm0, %v74_v39, 0.0  ;;  %v139_v52 = vpop.permute.xlu2 %138 }
  0x7e   :  { %v67_v40 = vpop.permute.xlu1 %66  ;;  %v92_v57 = vmul.f32 %v89_v38, %v80_v51  ;;  %v142_v9 = vmul.f32 %v139_v52, %v130_v5  ;;  %v647_v51 = vld [vmem:[%s1039_s2 + $0x40] sm:$0xff] }
  0x7f   :  { %v70_v58 = vmul.f32 %v67_v40, %v780_v4 }
  0x81   :  { %v94_v2 = vadd.f32 %v92_v57, %v70_v58  ;;  %v521_v58 = vld [vmem:[%s1039_s2 + $0x8] sm:$0xff] }
  0x84   :  { %v96_v43 = vpop.permute.xlu0 %95 }
  0x85   :  { %v104_v53 = vsel %vm47_vm1, %v96_v43, 0.0  ;;  %v159_v12 = vpop.permute.xlu2 %158 }
  0x86   :  { %v98_v44 = vpop.permute.xlu1 %97  ;;  %v116_v61 = vmul.f32 %v109_v41, %v104_v53 }
  0x87   :  { %v105_v60 = vsel %vm47_vm1, %v98_v44, 0.0  ;;  %v648_v44 = vld [vmem:[%s1039_s2 + $0x48] sm:$0xff] }
  0x88   :  { %v118_v6 = vadd.f32 %v116_v61, %v93_v1 }
  0x8c   :  { %v114_v48 = vpop.permute.xlu0 %113 }
  0x8d   :  { %v117_v62 = vmul.f32 %v114_v48, %v105_v60  ;;  %v198_v39 = vpop.permute.xlu2 %197  ;;  %v523_v48 = vld [vmem:[%s1039_s2 + $0x18] sm:$0xff] }
  0x8e   :  { %v121_v49 = vpop.permute.xlu1 %120 }
  0x8f   :  { %v129_v63 = vsel %vm51_vm2, %v121_v49, 0.0  ;;  %v119_v7 = vadd.f32 %v117_v62, %v94_v2 }
  0x91   :  { %v144_v17 = vadd.f32 %v142_v9, %v119_v7 }
  0x94   :  { %v146_v54 = vpop.permute.xlu0 %145 }
  0x95   :  { %v154_v8 = vsel %vm54_vm3, %v146_v54, 0.0  ;;  %v960_v46 = vpop.permute.xlu2 %247  ;;  %v649_v54 = vld [vmem:[%s1039_s2 + $0x50] sm:$0xff] }
  0x96   :  { %v134_v59 = vpop.permute.xlu1 %133  ;;  %v166_v15 = vmul.f32 %v159_v12, %v154_v8 }
  0x97   :  { %v141_v3 = vmul.f32 %v134_v59, %v129_v63  ;;  %v522_v59 = vld [vmem:[%s1039_s2 + $0x10] sm:$0xff] }
  0x99   :  { %v143_v10 = vadd.f32 %v141_v3, %v118_v6 }
  0x9b   :  { %v168_v18 = vadd.f32 %v166_v15, %v143_v10 }
  0x9c   :  { %v164_v13 = vpop.permute.xlu0 %163 }
  0x9d   :  { %v298_v49 = vpop.permute.xlu2 %297 }
  0x9e   :  { %v148_v11 = vpop.permute.xlu1 %147 }
  0x9f   :  { %v155_v14 = vsel %vm54_vm3, %v148_v11, 0.0 }
  0xa0   :  { %v167_v16 = vmul.f32 %v164_v13, %v155_v14 }
  0xa2   :  { %v169_v19 = vadd.f32 %v167_v16, %v144_v17 }
  0xa4   :  { %v174_v20 = vpack.c.bf16 %v169_v19, %v168_v18  ;;  %v183_v27 = vpop.permute.xlu0 %182 }
  0xa5   :  { %v388_v53 = vpop.permute.xlu2 %387 }
  0xa6   :  { %224 = vmatpush.bf16.msra.mxu0 %v174_v20  ;;  %v193_v26 = vpop.permute.xlu1 %192 }
  0xa9   :  { %629 = vmatmul.msk.bf16.vlgmr.msra.gmra.mxu0 %vm210_vm4, %v671_v21 }
  0xac   :  { %v932_v32 = vpop.permute.xlu0 %252 }
  0xad   :  { %v333_v57 = vpop.permute.xlu2 %332 }
  0xae   :  { %v188_v0 = vpop.permute.xlu1 %187 }
  0xb4   :  { %v258_v37 = vpop.permute.xlu0 %257 }
  0xb5   :  { %v438_v62 = vpop.permute.xlu2 %437 }
  0xb6   :  { %v263_v60 = vpop.permute.xlu1 %262 }
  0xb9   :  { %630 = vmatmul.msk.bf16.gmra.mxu0 %vm210_vm4, %v672_v22 }
  0xbc   :  { %v303_v52 = vpop.permute.xlu0 %302 }
  0xbd   :  { %v988_v2 = vpop.permute.xlu2 %377 }
  0xbe   :  { %v348_v63 = vpop.permute.xlu1 %347 }
  0xc4   :  { %v343_v56 = vpop.permute.xlu0 %342 }
  0xc6   :  { %v293_v3 = vpop.permute.xlu1 %292 }
  0xcc   :  { %v288_v61 = vpop.permute.xlu0 %287 }
  0xce   :  { %v433_v7 = vpop.permute.xlu1 %432 }
  0xd3   :  { %v569_v47 = vpop.f32.mrf.mxu2 }
  0xd4   :  { %v393_v1 = vpop.permute.xlu0 %392 }
  0xdc   :  { %v338_v5 = vpop.permute.xlu0 %337 }
  0xe4   :  { %v383_v8 = vpop.permute.xlu0 %382 }
 0x126   :  { %v226_v28 = vpop.f32.mrf.mxu0 }
 0x127   :  { %v227_v29 = vadd.f32 %v226_v28, %v183_v27 }
 0x129   :  { %v924_v30 = vmax.f32 %v227_v29, 0.0 }
 0x12b   :  { %358 = vrot.lane.b32.xlu0 %v924_v30, %s719_s18  ;;  %313 = vrot.lane.b32.xlu1 %v924_v30, %s718_s16 }
 0x12c   :  { %269 = vrot.lane.b32.xlu2 %v924_v30, %s717_s30 }
 0x12e   :  { %v228_v4 = vpop.f32.mrf.mxu0 }
 0x12f   :  { %v229_v31 = vadd.f32 %v228_v4, %v188_v0 }
 0x131   :  { %v934_v33 = vmax.f32 %v229_v31, 0.0 }
 0x133   :  { %271 = vrot.lane.b32.xlu0 %v934_v33, %s717_s30  ;;  %403 = vrot.lane.b32.xlu1 %v924_v30, %s720_s23  ;;  %v266_v20 = vmul.f32 %v932_v32, %v934_v33 }
 0x134   :  { %315 = vrot.lane.b32.xlu2 %v934_v33, %s718_s16 }
 0x136   :  { %v231_v34 = vpop.f32.mrf.mxu0 }
 0x137   :  { %v232_v35 = vadd.f32 %v231_v34, %v193_v26 }
 0x139   :  { %v238_v36 = vmax.f32 %v232_v35, 0.0 }
 0x13b   :  { %407 = vrot.lane.b32.xlu0 %v238_v36, %s720_s23  ;;  %360 = vrot.lane.b32.xlu1 %v934_v33, %s719_s18  ;;  %v945_v38 = vmul.f32 %v258_v37, %v238_v36 }
 0x13e   :  { %v233_v40 = vpop.f32.mrf.mxu0 }
 0x13f   :  { %v234_v41 = vadd.f32 %v233_v40, %v198_v39 }
 0x141   :  { %v239_v43 = vmax.f32 %v234_v41, 0.0 }
 0x143   :  { %422 = vperm.xlu0 %689, %v643_v42   ;;  %273 = vrot.lane.b32.xlu1 %v238_v36, %s717_s30  ;;  %v268_v17 = vmul.f32 %v263_v60, %v239_v43 }
 0x144   :  { %275 = vrot.lane.b32.xlu2 %v239_v43, %s717_s30 }
 0x14b   :  { %466 = vperm.xlu0 %689, %v648_v44   ;;  %317 = vrot.lane.b32.xlu1 %v238_v36, %s718_s16 }
 0x14c   :  { %319 = vrot.lane.b32.xlu2 %v239_v43, %s718_s16 }
 0x153   :  { %526 = vperm.xlu0 %689, %v520_v45   ;;  %362 = vrot.lane.b32.xlu1 %v238_v36, %s719_s18 }
 0x154   :  { %364 = vrot.lane.b32.xlu2 %v239_v43, %s719_s18 }
 0x15b   :  { %541 = vperm.xlu0 %689, %v523_v48   ;;  %409 = vrot.lane.b32.xlu1 %v239_v43, %s720_s23 }
 0x15c   :  { %405 = vrot.lane.b32.xlu2 %v934_v33, %s720_s23 }
 0x163   :  { %427 = vperm.xlu1 %687, %v644_v50   ;;  %v265_v50 = vmul.f32 %v960_v46, %v924_v30 }
 0x164   :  { %461 = vperm.xlu2 %688, %v647_v51  }
 0x16b   :  { %471 = vperm.xlu1 %687, %v649_v54  }
 0x16c   :  { %476 = vperm.xlu2 %688, %v650_v55  }
 0x173   :  { %531 = vperm.xlu1 %687, %v521_v58  }
 0x174   :  { %536 = vperm.xlu2 %688, %v522_v59  }
 0x186   :  { %v270_v6 = vpop.permute.xlu2 %269 }
 0x187   :  { %v281_v42 = vsel %vm44_vm0, %v270_v6, 0.0 }
 0x188   :  { %v305_v45 = vmul.f32 %v288_v61, %v281_v42 }
 0x18a   :  { %v309_v59 = vadd.f32 %v305_v45, %v265_v50 }
 0x18e   :  { %v316_v9 = vpop.permute.xlu2 %315 }
 0x18f   :  { %v327_v51 = vsel %vm47_vm1, %v316_v9, 0.0 }
 0x190   :  { %v351_v46 = vmul.f32 %v338_v5, %v327_v51 }
 0x19d   :  { %v359_v10 = vpop.permute.xlu0 %358  ;;  %v314_v11 = vpop.permute.xlu1 %313 }
 0x19e   :  { %v276_v12 = vpop.permute.xlu2 %275  ;;  %v326_v43 = vsel %vm47_vm1, %v314_v11, 0.0  ;;  %v371_v60 = vsel %vm51_vm2, %v359_v10, 0.0 }
 0x19f   :  { %v284_v13 = vsel %vm44_vm0, %v276_v12, 0.0  ;;  %v395_v9 = vmul.f32 %v988_v2, %v371_v60  ;;  %v674_v2 = vld [vmem:[%s1043_s6 + $0x8] sm:$0xff] }
 0x1a0   :  { %v308_v14 = vmul.f32 %v303_v52, %v284_v13  ;;  %v350_v52 = vmul.f32 %v333_v57, %v326_v43 }
 0x1a2   :  { %v312_v23 = vadd.f32 %v308_v14, %v268_v17 }
 0x1a5   :  { %v272_v15 = vpop.permute.xlu0 %271  ;;  %v404_v16 = vpop.permute.xlu1 %403 }
 0x1a6   :  { %v282_v18 = vsel %vm44_vm0, %v272_v15, 0.0  ;;  %v320_v19 = vpop.permute.xlu2 %319  ;;  %v416_v6 = vsel %vm54_vm3, %v404_v16, 0.0  ;;  %v673_v16 = vld [vmem:[%s1043_s6] sm:$0xff]  ;;  %s721_s6 = smov [#allocation2]  }
 0x1a7   :  { %v306_v21 = vmul.f32 %v293_v3, %v282_v18  ;;  %v329_v22 = vsel %vm47_vm1, %v320_v19, 0.0  ;;  %s595_s11 = sshll.u32 %s721_s6, 4  ;;  %s596_s11 = int_to_ptr.vmem [resolvable:$true] %s595_s11 }
 0x1a8   :  { %v353_v24 = vmul.f32 %v348_v63, %v329_v22 }
 0x1a9   :  { %v310_v25 = vadd.f32 %v306_v21, %v266_v20  ;;  %v571_v20 = vpop.f32.mrf.mxu2 }
 0x1aa   :  { %v357_v26 = vadd.f32 %v353_v24, %v312_v23 }
 0x1ab   :  { %v355_v11 = vadd.f32 %v351_v46, %v310_v25 }
 0x1ad   :  { %v361_v27 = vpop.permute.xlu1 %360  ;;  %v408_v37 = vpop.permute.xlu0 %407 }
 0x1ae   :  { %v365_v34 = vpop.permute.xlu2 %364  ;;  %v418_v48 = vsel %vm54_vm3, %v408_v37, 0.0  ;;  %v372_v55 = vsel %vm51_vm2, %v361_v27, 0.0 }
 0x1af   :  { %v374_v41 = vsel %vm51_vm2, %v365_v34, 0.0  ;;  %v442_v54 = vmul.f32 %v433_v7, %v418_v48  ;;  %v396_v3 = vmul.f32 %v383_v8, %v372_v55 }
 0x1b0   :  { %v398_v44 = vmul.f32 %v393_v1, %v374_v41  ;;  %v354_v1 = vadd.f32 %v350_v52, %v309_v59 }
 0x1b1   :  { %v400_v10 = vadd.f32 %v396_v3, %v355_v11  ;;  %v574_v27 = vpop.f32.mrf.mxu2 }
 0x1b2   :  { %v399_v14 = vadd.f32 %v395_v9, %v354_v1 }
 0x1b5   :  { %v274_v28 = vpop.permute.xlu1 %273  ;;  %v423_v61 = vpop.permute.xlu0 %422 }
 0x1b6   :  { %v283_v29 = vsel %vm44_vm0, %v274_v28, 0.0  ;;  %v406_v57 = vpop.permute.xlu2 %405  ;;  %v440_v12 = vmul.f32 %v423_v61, %v416_v6 }
 0x1b7   :  { %v307_v0 = vmul.f32 %v298_v49, %v283_v29 }
 0x1b8   :  { %v444_v15 = vadd.f32 %v440_v12, %v399_v14 }
 0x1b9   :  { %v311_v4 = vadd.f32 %v307_v0, %v945_v38  ;;  %v576_v41 = vpop.f32.mrf.mxu2 }
 0x1bd   :  { %v318_v31 = vpop.permute.xlu1 %317  ;;  %v467_v19 = vpop.permute.xlu0 %466 }
 0x1be   :  { %v328_v32 = vsel %vm47_vm1, %v318_v31, 0.0  ;;  %v462_v18 = vpop.permute.xlu2 %461 }
 0x1bf   :  { %v352_v33 = vmul.f32 %v343_v56, %v328_v32  ;;  %v402_v56 = vadd.f32 %v398_v44, %v357_v26 }
 0x1c1   :  { %v356_v39 = vadd.f32 %v352_v33, %v311_v4 }
 0x1c5   :  { %v363_v35 = vpop.permute.xlu1 %362  ;;  %v527_v23 = vpop.permute.xlu0 %526 }
 0x1c6   :  { %v373_v36 = vsel %vm51_vm2, %v363_v35, 0.0  ;;  %v477_v21 = vpop.permute.xlu2 %476  ;;  %v570_v25 = vadd.f32 %v569_v47, %v527_v23 }
 0x1c7   :  { %v397_v40 = vmul.f32 %v388_v53, %v373_v36 }
 0x1c9   :  { %v401_v38 = vadd.f32 %v397_v40, %v356_v39 }
 0x1cb   :  { %v446_v63 = vadd.f32 %v442_v54, %v401_v38 }
 0x1cd   :  { %v410_v49 = vpop.permute.xlu1 %409  ;;  %v542_v42 = vpop.permute.xlu0 %541 }
 0x1ce   :  { %v419_v53 = vsel %vm54_vm3, %v410_v49, 0.0  ;;  %v537_v29 = vpop.permute.xlu2 %536  ;;  %v577_v44 = vadd.f32 %v576_v41, %v542_v42 }
 0x1cf   :  { %v443_v58 = vmul.f32 %v438_v62, %v419_v53  ;;  %v417_v62 = vsel %vm54_vm3, %v406_v57, 0.0  ;;  %v575_v32 = vadd.f32 %v574_v27, %v537_v29 }
 0x1d1   :  { %v447_v30 = vadd.f32 %v443_v58, %v402_v56 }
 0x1d3   :  { %v453_v7 = vpack.c.bf16 %v447_v30, %v446_v63 }
 0x1d5   :  { %v428_v13 = vpop.permute.xlu1 %427  ;;  %502 = vmatpush.bf16.msra.mxu1 %v453_v7  ;;  %677 = vmatpush.bf16.msra.mxu3 %v453_v7 }
 0x1d6   :  { %v441_v5 = vmul.f32 %v428_v13, %v417_v62 }
 0x1d8   :  { %v445_v8 = vadd.f32 %v441_v5, %v400_v10 }
 0x1da   :  { %v452_v17 = vpack.c.bf16 %v445_v8, %v444_v15 }
 0x1dc   :  { %503 = vmatpush.bf16.msra.mxu1 %v452_v17  ;;  %678 = vmatpush.bf16.msra.mxu3 %v452_v17 }
 0x1dd   :  { %v472_v22 = vpop.permute.xlu1 %471 }
 0x1df   :  { %659 = vmatmul.msk.bf16.vlgmr.msra.gmra.mxu1 %vm489_vm5, %v673_v16  ;;  %660 = vmatmul.msk.bf16.vlgmr.msra.gmra.mxu3 %vm489_vm5, %v674_v2 }
 0x1e5   :  { %v532_v4 = vpop.permute.xlu1 %531 }
 0x1e6   :  { %v572_v35 = vadd.f32 %v571_v20, %v532_v4 }
 0x25c   :  { %v505_v24 = vpop.f32.mrf.mxu1 }
 0x25d   :  { %v506_v26 = vadd.f32 %v505_v24, %v462_v18 }
 0x25f   :  { %v579_v28 = vadd.f32 %v570_v25, %v506_v26 }
 0x261   :  { %v583_v0 = vmax.f32 %v579_v28, 0.0 }
 0x262   :  { %v510_v31 = vpop.f32.mrf.mxu3 }
 0x263   :  { %587 = vst [vmem:[#allocation2] sm:$0xff] %v583_v0  ;;  %v511_v33 = vadd.f32 %v510_v31, %v472_v22 }
 0x264   :  { %v507_v34 = vpop.f32.mrf.mxu1 }
 0x265   :  { %v581_v36 = vadd.f32 %v575_v32, %v511_v33  ;;  %v508_v37 = vadd.f32 %v507_v34, %v467_v19 }
 0x267   :  { %v585_v39 = vmax.f32 %v581_v36, 0.0  ;;  %v580_v40 = vadd.f32 %v572_v35, %v508_v37 }
 0x269   :  { %589 = vst [vmem:[#allocation2 + $0x10] sm:$0xff] %v585_v39  ;;  %v584_v38 = vmax.f32 %v580_v40, 0.0 }
 0x26a   :  { %v512_v43 = vpop.f32.mrf.mxu3 }
 0x26b   :  { %588 = vst [vmem:[#allocation2 + $0x8] sm:$0xff] %v584_v38  ;;  %v513_v45 = vadd.f32 %v512_v43, %v477_v21 }
 0x26d   :  { %v582_v48 = vadd.f32 %v577_v44, %v513_v45 }
 0x26f   :  { %v586_v49 = vmax.f32 %v582_v48, 0.0 }
 0x271   :  { %590 = vst [vmem:[#allocation2 + $0x18] sm:$0xff] %v586_v49 }
 0x272   :  { %603 = dma.vmem_to_hbm [thread:$0]  %s596_s11, 512, %s598_s13, [#allocation3], %s722_s14, %s722_s14, %s723_s1  }
 0x273   :  { %714 = dma.done.wait [#allocation3], 512  }
 0x274   :  { %715 = vsyncadd [#allocation3], 4294966784 }
 0x275   :  { %608 = vsyncpa [#allocation3], 1 }

</bundles_post_ra>
